<compile_context>
chip_gen: v7x
topology: tpu7x:2x2x1
jax: 0.10.0
libtpu: 0.0.40
codegen_flags: <defaults>
</compile_context>

<pallas_src>
import math
import functools

import jax
import jax.numpy as jnp
from jax.experimental import pallas as pl
from jax.experimental.pallas import tpu as pltpu

EPSILON = 1e-06
LOG_EPS = math.log(EPSILON)          # torch.clamp bounds: [log_eps, -log_eps]


def _am_net_kernel(x_ref, p_ref, out_ref):
    # Shapes:
    #   x_ref   : (TB, 8)   batch tile (sublanes) x features
    #   p_ref   : (40, 64)  packed weights/biases, resident across the grid
    #   out_ref : (2,  TB)  lane-dense fused output block, rows = [y1, y2]
    x = x_ref[...]

    w1 = p_ref[0:32, 0:8]        # fc1 weight, PyTorch (out, in) storage
    b1 = p_ref[0:32, 8:9]        # fc1 bias   (out, 1)
    w2 = p_ref[0:32, 16:48]      # fc2 weight
    b2 = p_ref[0:32, 48:49]      # fc2 bias
    w3 = p_ref[32:36, 0:32]      # fused heads, rows = [fc31, fc33, fc32, fc34]
    b3 = p_ref[32:36, 32:33]     # fused head biases

    # fc1 + relu: contract x's minor (feature) axis so the batch moves onto
    # the lane axis inside the kernel (no wrapper transpose).      (32, TB)
    h = jax.lax.dot_general(w1, x, (((1,), (1,)), ((), ())),
                            preferred_element_type=jnp.float32) + b1
    h = jnp.maximum(h, 0.0)

    # fc2 + relu                                                   (32, TB)
    h = jnp.dot(w2, h, preferred_element_type=jnp.float32) + b2
    h = jnp.maximum(h, 0.0)

    # fused heads: rows [y1b, y2b, y1a, y2a]                       (4, TB)
    heads = jnp.dot(w3, h, preferred_element_type=jnp.float32) + b3
    heads = jnp.clip(heads, LOG_EPS, -LOG_EPS)        # matches torch.clamp
    # clamp bounds |heads| <= 13.8, so exp() cannot overflow here
    sp = jnp.log(jnp.exp(heads) + 1.0) + 1.0          # shifted softplus

    y_b = sp[0:2, :]                                  # [y1b, y2b]
    y_a = sp[2:4, :]                                  # [y1a, y2a]
    den = jnp.maximum(y_a + y_b, EPSILON)
    frac = y_b * pl.reciprocal(den, approx=False)     # (2, TB)

    # Scalar constants only (no captured array constants); two full-lane-width
    # row stores into the lane-dense (2, TB) output block.
    out_ref[0:1, :] = -5.0 + 10.0 * frac[0:1, :]      # y1
    out_ref[1:2, :] = 0.154333 * frac[1:2, :]         # y2


def _round_up(n, m):
    return (n + m - 1) // m * m


def _tensorcore_count():
    """Best-effort TensorCore count (v7x = 2, earlier inference chips = 1)."""
    try:
        kind = (jax.devices()[0].device_kind or "").lower()
    except Exception:
        return 1
    return 2 if "v7" in kind else 1


@functools.partial(jax.jit, static_argnames=("tile_b",))
def am_net_forward(x, packed_params, *, tile_b=None):
    """x: (B, 8) f32, packed_params: (40, 64) f32. Returns (y1, y2), each (B, 1)."""
    B, F = x.shape
    assert F == 8

    cores = _tensorcore_count()
    # Large batch tiles amortize the ~0.35 us per-grid-step overhead.  On v7x
    # cap at 8192: the (tile, 8) f32 input block lane-pads ~16x in VMEM and
    # v7x only has 64 MiB physical (32 MiB default-scoped) VMEM.
    if tile_b is None:
        tile_b = 8192 if cores > 1 else 16384
    tile = _round_up(max(int(tile_b), 128), 128)
    if cores > 1:
        # Keep >= `cores` grid steps once B is large enough so the "parallel"
        # batch axis can shard across the TensorCores.  On single-TC chips the
        # grid is a serial loop, so never split just for the sake of it.
        tile = min(tile, _round_up(pl.cdiv(B, cores), 128))
    tile = max(128, min(tile, _round_up(B, 128)))
    Bp = _round_up(B, tile)

    if Bp != B:
        x = jnp.pad(x, ((0, Bp - B), (0, 0)))          # single copy, no transpose

    # Right-sized VMEM request:
    #   input (tile, 8) f32 lane-padded ~16x  -> 512 B/sample, double-buffered
    #   output (2, tile) f32, sublane-padded  ->  32 B/sample, double-buffered
    #   in-kernel intermediates (transposed x, two (32, tile) h buffers, heads)
    vmem_bytes = int(tile * (2 * 512 + 2 * 32 + 512 + 2 * 128 + 64)) + (4 << 20)

    out = pl.pallas_call(
        _am_net_kernel,
        out_shape=jax.ShapeDtypeStruct((2, Bp), jnp.float32),
        grid_spec=pltpu.PrefetchScalarGridSpec(
            num_scalar_prefetch=0,
            grid=(Bp // tile,),
            in_specs=[
                pl.BlockSpec((tile, 8), lambda i: (i, 0)),   # x batch tile
                pl.BlockSpec((40, 64), lambda i: (0, 0)),    # packed params (resident)
            ],
            out_specs=pl.BlockSpec((2, tile), lambda i: (0, i)),  # fused [y1; y2]
        ),
        compiler_params=pltpu.CompilerParams(
            dimension_semantics=("parallel",),
            vmem_limit_bytes=vmem_bytes,
        ),
    )(x, packed_params)

    # Contiguous row slices of the lane-dense (2, Bp) result -- no transpose,
    # no extra relayout pass over HBM.
    y1 = out[0, :B][:, None]
    y2 = out[1, :B][:, None]
    return y1, y2


def init_params(key):
    """Deterministic synthetic parameters matching the PyTorch module shapes.

    Weights stay in PyTorch's (out, in) storage order; biases as (out, 1).
    The four 32->1 heads are fused into one (4, 32) linear with row order
    [fc31 (y1b), fc33 (y2b), fc32 (y1a), fc34 (y2a)]."""
    ks = jax.random.split(key, 12)

    def linear(kw, kb, fan_in, fan_out):
        bound = 1.0 / math.sqrt(fan_in)
        w = jax.random.uniform(kw, (fan_out, fan_in), jnp.float32, -bound, bound)
        b = jax.random.uniform(kb, (fan_out, 1), jnp.float32, -bound, bound)
        return w, b

    w1, b1 = linear(ks[0], ks[1], 8, 32)        # fc1
    w2, b2 = linear(ks[2], ks[3], 32, 32)       # fc2
    w31, b31 = linear(ks[4], ks[5], 32, 1)      # fc31 -> y1b
    w32, b32 = linear(ks[6], ks[7], 32, 1)      # fc32 -> y1a
    w33, b33 = linear(ks[8], ks[9], 32, 1)      # fc33 -> y2b
    w34, b34 = linear(ks[10], ks[11], 32, 1)    # fc34 -> y2a

    w3 = jnp.concatenate([w31, w33, w32, w34], axis=0)   # (4, 32): [y1b,y2b,y1a,y2a]
    b3 = jnp.concatenate([b31, b33, b32, b34], axis=0)   # (4, 1)
    return w1, b1, w2, b2, w3, b3


def pack_params(params):
    """Pack all weights/biases into one resident (40, 64) f32 block (1 DMA)."""
    w1, b1, w2, b2, w3, b3 = params
    p = jnp.zeros((40, 64), jnp.float32)
    p = p.at[0:32, 0:8].set(w1)
    p = p.at[0:32, 8:9].set(b1)
    p = p.at[0:32, 16:48].set(w2)
    p = p.at[0:32, 48:49].set(b2)
    p = p.at[32:36, 0:32].set(w3)
    p = p.at[32:36, 32:33].set(b3)
    return p


def reference_forward(x, params):
    """Pure-JAX reference mirroring the PyTorch forward exactly (pinned f32 dots)."""
    w1, b1, w2, b2, w3, b3 = params
    hp = jax.lax.Precision.HIGHEST
    h = jnp.maximum(jnp.dot(x, w1.T, precision=hp) + b1.T, 0.0)
    h = jnp.maximum(jnp.dot(h, w2.T, precision=hp) + b2.T, 0.0)
    heads = jnp.clip(jnp.dot(h, w3.T, precision=hp) + b3.T, LOG_EPS, -LOG_EPS)
    sp = jnp.log(jnp.exp(heads) + 1.0) + 1.0
    y1b, y2b, y1a, y2a = sp[:, 0:1], sp[:, 1:2], sp[:, 2:3], sp[:, 3:4]
    y1 = -5.0 + 10.0 * (y1b / jnp.maximum(y1a + y1b, EPSILON))
    y2 = 0.154333 * (y2b / jnp.maximum(y2a + y2b, EPSILON))
    return y1, y2


if __name__ == "__main__":
    key = jax.random.PRNGKey(0)
    k_param, k_x = jax.random.split(key)

    params = init_params(k_param)
    packed = pack_params(params)

    B = 300                                   # deliberately not a multiple of 128
    x = jax.random.normal(k_x, (B, 8), jnp.float32)

    y1, y2 = am_net_forward(x, packed)
    jax.block_until_ready((y1, y2))

    # sanity check against the pure-JAX reference (tolerance accounts for the
    # MXU's multi-pass f32 matmul vs. the HIGHEST-precision reference)
    r1, r2 = reference_forward(x, params)
    assert y1.shape == (B, 1) and y2.shape == (B, 1)
    assert jnp.allclose(y1, r1, atol=1e-4, rtol=1e-4), float(jnp.max(jnp.abs(y1 - r1)))
    assert jnp.allclose(y2, r2, atol=1e-4, rtol=1e-4), float(jnp.max(jnp.abs(y2 - r2)))

    print("KERNEL_OK")
</pallas_src>

<mosaic_0001>
module attributes {stable_mosaic.version = 11 : i64} {
  func.func @_am_net_kernel(%arg0: i32, %arg1: memref<384x8xf32, #tpu.memory_space<vmem>>, %arg2: memref<40x64xf32, #tpu.memory_space<vmem>>, %arg3: memref<2x384xf32, #tpu.memory_space<vmem>>) attributes {dimension_semantics = [#tpu.dimension_semantics<parallel>], iteration_bounds = array<i64: 1>, scalar_prefetch = 0 : i64, scratch_operands = 0 : i64, tpu.core_type = #tpu.core_type<tc>, window_params = [{transform_indices = @transform_0, window_bounds = array<i64: 384, 8>}, {pipeline_mode = #tpu.pipeline_mode<synchronous>, transform_indices = @transform_1, window_bounds = array<i64: 40, 64>}, {transform_indices = @transform_2, window_bounds = array<i64: 2, 384>}]} {
    %c0 = arith.constant 0 : index
    %c0_0 = arith.constant 0 : index
    %0 = vector.load %arg1[%c0, %c0_0] : memref<384x8xf32, #tpu.memory_space<vmem>>, vector<384x8xf32>
    %c0_1 = arith.constant 0 : index
    %c0_2 = arith.constant 0 : index
    %1 = vector.load %arg2[%c0_1, %c0_2] : memref<40x64xf32, #tpu.memory_space<vmem>>, vector<32x8xf32>
    %c0_3 = arith.constant 0 : index
    %c8 = arith.constant 8 : index
    %2 = vector.load %arg2[%c0_3, %c8] : memref<40x64xf32, #tpu.memory_space<vmem>>, vector<32x1xf32>
    %c0_4 = arith.constant 0 : index
    %c16 = arith.constant 16 : index
    %3 = vector.load %arg2[%c0_4, %c16] : memref<40x64xf32, #tpu.memory_space<vmem>>, vector<32x32xf32>
    %c0_5 = arith.constant 0 : index
    %c48 = arith.constant 48 : index
    %4 = vector.load %arg2[%c0_5, %c48] : memref<40x64xf32, #tpu.memory_space<vmem>>, vector<32x1xf32>
    %c32 = arith.constant 32 : index
    %c0_6 = arith.constant 0 : index
    %5 = vector.load %arg2[%c32, %c0_6] : memref<40x64xf32, #tpu.memory_space<vmem>>, vector<4x32xf32>
    %c32_7 = arith.constant 32 : index
    %c32_8 = arith.constant 32 : index
    %6 = vector.load %arg2[%c32_7, %c32_8] : memref<40x64xf32, #tpu.memory_space<vmem>>, vector<4x1xf32>
    %cst = arith.constant dense<0.000000e+00> : vector<32x384xf32>
    %7 = tpu.matmul %1, %0, %cst {dimension_numbers = #tpu.dot_dimension_numbers<[1], [1], [0], [0], [0, 0, 1, 0], [], []>} : vector<32x8xf32>, vector<384x8xf32>, vector<32x384xf32> -> vector<32x384xf32>
    %8 = vector.broadcast %2 : vector<32x1xf32> to vector<32x384xf32>
    %9 = arith.addf %7, %8 : vector<32x384xf32>
    %cst_9 = arith.constant 0.000000e+00 : f32
    %10 = vector.broadcast %cst_9 : f32 to vector<32x384xf32>
    %11 = arith.maximumf %9, %10 : vector<32x384xf32>
    %cst_10 = arith.constant dense<0.000000e+00> : vector<32x384xf32>
    %12 = tpu.matmul %3, %11, %cst_10 {dimension_numbers = #tpu.dot_dimension_numbers<[1], [0], [0], [1], [0, 0, 1, 1], [], []>} : vector<32x32xf32>, vector<32x384xf32>, vector<32x384xf32> -> vector<32x384xf32>
    %13 = vector.broadcast %4 : vector<32x1xf32> to vector<32x384xf32>
    %14 = arith.addf %12, %13 : vector<32x384xf32>
    %cst_11 = arith.constant 0.000000e+00 : f32
    %15 = vector.broadcast %cst_11 : f32 to vector<32x384xf32>
    %16 = arith.maximumf %14, %15 : vector<32x384xf32>
    %cst_12 = arith.constant dense<0.000000e+00> : vector<4x384xf32>
    %17 = tpu.matmul %5, %16, %cst_12 {dimension_numbers = #tpu.dot_dimension_numbers<[1], [0], [0], [1], [0, 0, 1, 1], [], []>} : vector<4x32xf32>, vector<32x384xf32>, vector<4x384xf32> -> vector<4x384xf32>
    %18 = vector.broadcast %6 : vector<4x1xf32> to vector<4x384xf32>
    %19 = arith.addf %17, %18 : vector<4x384xf32>
    %cst_13 = arith.constant -13.8155107 : f32
    %cst_14 = arith.constant 13.8155107 : f32
    %20 = vector.broadcast %cst_13 : f32 to vector<4x384xf32>
    %21 = arith.maximumf %20, %19 : vector<4x384xf32>
    %22 = vector.broadcast %cst_14 : f32 to vector<4x384xf32>
    %23 = arith.minimumf %22, %21 : vector<4x384xf32>
    %24 = math.exp %23 : vector<4x384xf32>
    %cst_15 = arith.constant 1.000000e+00 : f32
    %25 = vector.broadcast %cst_15 : f32 to vector<4x384xf32>
    %26 = arith.addf %24, %25 : vector<4x384xf32>
    %27 = math.log %26 : vector<4x384xf32>
    %cst_16 = arith.constant 1.000000e+00 : f32
    %28 = vector.broadcast %cst_16 : f32 to vector<4x384xf32>
    %29 = arith.addf %27, %28 : vector<4x384xf32>
    %30 = vector.extract_strided_slice %29 {offsets = [0, 0], sizes = [2, 384], strides = [1, 1]} : vector<4x384xf32> to vector<2x384xf32>
    %31 = vector.extract_strided_slice %29 {offsets = [2, 0], sizes = [2, 384], strides = [1, 1]} : vector<4x384xf32> to vector<2x384xf32>
    %32 = arith.addf %31, %30 : vector<2x384xf32>
    %cst_17 = arith.constant 9.99999997E-7 : f32
    %33 = vector.broadcast %cst_17 : f32 to vector<2x384xf32>
    %34 = arith.maximumf %32, %33 : vector<2x384xf32>
    %35 = tpu.reciprocal %34 : vector<2x384xf32> -> vector<2x384xf32>
    %36 = arith.mulf %30, %35 : vector<2x384xf32>
    %37 = vector.extract_strided_slice %36 {offsets = [0, 0], sizes = [1, 384], strides = [1, 1]} : vector<2x384xf32> to vector<1x384xf32>
    %cst_18 = arith.constant 1.000000e+01 : f32
    %38 = vector.broadcast %cst_18 : f32 to vector<1x384xf32>
    %39 = arith.mulf %38, %37 : vector<1x384xf32>
    %cst_19 = arith.constant -5.000000e+00 : f32
    %40 = vector.broadcast %cst_19 : f32 to vector<1x384xf32>
    %41 = arith.addf %40, %39 : vector<1x384xf32>
    %c0_20 = arith.constant 0 : index
    %c0_21 = arith.constant 0 : index
    %42 = vector.load %arg3[%c0_20, %c0_21] : memref<2x384xf32, #tpu.memory_space<vmem>>, vector<1x384xf32>
    tpu.vector_store %arg3[%c0_20, %c0_21], %41 {strides = array<i32>} : memref<2x384xf32, #tpu.memory_space<vmem>>, vector<1x384xf32>,
    %43 = vector.extract_strided_slice %36 {offsets = [1, 0], sizes = [1, 384], strides = [1, 1]} : vector<2x384xf32> to vector<1x384xf32>
    %cst_22 = arith.constant 1.543330e-01 : f32
    %44 = vector.broadcast %cst_22 : f32 to vector<1x384xf32>
    %45 = arith.mulf %44, %43 : vector<1x384xf32>
    %c1 = arith.constant 1 : index
    %c0_23 = arith.constant 0 : index
    %46 = vector.load %arg3[%c1, %c0_23] : memref<2x384xf32, #tpu.memory_space<vmem>>, vector<1x384xf32>
    tpu.vector_store %arg3[%c1, %c0_23], %45 {strides = array<i32>} : memref<2x384xf32, #tpu.memory_space<vmem>>, vector<1x384xf32>,
    return
  }
  func.func @transform_0(%arg0: i32) -> (i32, i32) {
    %c0_i32 = arith.constant 0 : i32
    %c0_i32_0 = arith.constant 0 : i32
    return %arg0, %c0_i32 : i32, i32
  }
  func.func @transform_1(%arg0: i32) -> (i32, i32) {
    %c0_i32 = arith.constant 0 : i32
    %c0_i32_0 = arith.constant 0 : i32
    %c0_i32_1 = arith.constant 0 : i32
    return %c0_i32, %c0_i32_0 : i32, i32
  }
  func.func @transform_2(%arg0: i32) -> (i32, i32) {
    %c0_i32 = arith.constant 0 : i32
    %c0_i32_0 = arith.constant 0 : i32
    return %c0_i32, %arg0 : i32, i32
  }
}

</mosaic_0001>

<bundles_post_ra>
// kernel: am_net_forward.1
= control target key start
LH: loop header
LB: loop body
LE: loop exit
PB: predicated region body
PF: predicated region fallthrough
CT: control target
= control target key end

     0   :  { %vm84_vm0 = vcmask 64512   ;;  %v1282_v3 = vmov 8   ;;  %s1283_s17 = smov 112   ;;  %vm447_vm2 = vcmask 261120   ;;  %vm1287_vm3 = vmmov 0   ;;  %s1604_s0 = inlined_call_operand.vmem [shape: f32[384,8], index: 0, kind: input, shape index: {}]   ;;  %s1605_s1 = inlined_call_operand.vmem [shape: f32[40,64], index: 1, kind: input, shape index: {}]   ;;  %s1606_s2 = inlined_call_operand.vmem [shape: f32[2,384], index: 2, kind: output, shape index: {}]  }
   0x1   :  { %v27_v0 = vld [vmem:[%s1604_s0 + $0x80] sm:$0xff]  ;;  %v28_v1 = vld [vmem:[%s1604_s0 + $0x88] sm:$0xff]  ;;  %vm1313_vm1 = vmpackc.low %vm84_vm0, %vm84_vm0  ;;  %1258 = vset.pattern.permute.xlu0 %v1282_v3  ;;  %1259 = vset.pattern.permute.xlu1 %v1282_v3 }
   0x2   :  { %v1124_v4 = vpack.c.bf16 %v28_v1, %v27_v0  ;;  %v43_v5 = vld [vmem:[%s1604_s0 + $0x100] sm:$0xff]  ;;  %v44_v6 = vld [vmem:[%s1604_s0 + $0x108] sm:$0xff]  ;;  %v29_v10 = vld [vmem:[%s1604_s0 + $0x90] sm:$0xff] }
   0x3   :  { %v11_v7 = vld [vmem:[%s1604_s0] sm:$0xff]  ;;  %v1172_v8 = vpack.c.bf16 %v44_v6, %v43_v5  ;;  %v12_v9 = vld [vmem:[%s1604_s0 + $0x8] sm:$0xff]  ;;  %v30_v11 = vld [vmem:[%s1604_s0 + $0x98] sm:$0xff] }
   0x4   :  { %1126 = vmatprep.subr.msk.bf16.mxu0 %vm1313_vm1, %v1124_v4  ;;  %v1127_v12 = vpack.c.bf16 %v12_v9, %v11_v7  ;;  %v1130_v13 = vpack.c.bf16 %v30_v11, %v29_v10  ;;  %v45_v14 = vld [vmem:[%s1604_s0 + $0x110] sm:$0xff]  ;;  %v46_v15 = vld [vmem:[%s1604_s0 + $0x118] sm:$0xff]  ;;  %v31_v19 = vld [vmem:[%s1604_s0 + $0xa0] sm:$0xff] }
   0x5   :  { %1174 = vmatprep.subr.msk.bf16.mxu1 %vm1313_vm1, %v1172_v8  ;;  %v1178_v16 = vpack.c.bf16 %v46_v15, %v45_v14  ;;  %v13_v17 = vld [vmem:[%s1604_s0 + $0x10] sm:$0xff]  ;;  %v14_v18 = vld [vmem:[%s1604_s0 + $0x18] sm:$0xff]  ;;  %v32_v20 = vld [vmem:[%s1604_s0 + $0xa8] sm:$0xff] }
   0x6   :  { %1129 = vmatpush3.bf16.xpose.msk.msra.mxu0 %vm1313_vm1, %v1127_v12  ;;  %1177 = vmatpush3.bf16.xpose.msk.msra.mxu1 %vm1313_vm1, %v1172_v8  ;;  %v47_v21 = vld [vmem:[%s1604_s0 + $0x120] sm:$0xff]  ;;  %v48_v22 = vld [vmem:[%s1604_s0 + $0x128] sm:$0xff]  ;;  %v1133_v23 = vpack.c.bf16 %v14_v18, %v13_v17  ;;  %v1136_v24 = vpack.c.bf16 %v32_v20, %v31_v19  ;;  %v33_v28 = vld [vmem:[%s1604_s0 + $0xb0] sm:$0xff]  ;;  %v1284_v17 = vmov 0.0   ;;  %v1285_v18 = vmov 48  }
   0x7   :  { %1132 = vmatprep.subr.msk.bf16.mxu0 %vm1313_vm1, %v1130_v13  ;;  %1180 = vmatprep.subr.msk.bf16.mxu1 %vm1313_vm1, %v1178_v16  ;;  %v1184_v25 = vpack.c.bf16 %v48_v22, %v47_v21  ;;  %v15_v26 = vld [vmem:[%s1604_s0 + $0x20] sm:$0xff]  ;;  %v16_v27 = vld [vmem:[%s1604_s0 + $0x28] sm:$0xff]  ;;  %v34_v29 = vld [vmem:[%s1604_s0 + $0xb8] sm:$0xff] }
   0x8   :  { %v49_v30 = vld [vmem:[%s1604_s0 + $0x130] sm:$0xff]  ;;  %v50_v31 = vld [vmem:[%s1604_s0 + $0x138] sm:$0xff]  ;;  %v1400_v32 = vld [vmem:[%s1605_s1] sm:$0xff]  ;;  %v1139_v33 = vpack.c.bf16 %v16_v27, %v15_v26  ;;  %v1142_v35 = vpack.c.bf16 %v34_v29, %v33_v28 }
   0x9   :  { %1020 = vmatprep.mubr.msk.f32.mxu0 %vm84_vm0, %v1400_v32  ;;  %1093 = vmatprep.mubr.msk.f32.mxu1 %vm84_vm0, %v1400_v32  ;;  %v1409_v34 = vld [vmem:[%s1605_s1 + $0x10] sm:$0xff]  ;;  %v1190_v36 = vpack.c.bf16 %v50_v31, %v49_v30  ;;  %v18_v38 = vld [vmem:[%s1604_s0 + $0x38] sm:$0xff]  ;;  %v35_v39 = vld [vmem:[%s1604_s0 + $0xc0] sm:$0xff] }
   0xa   :  { %66 = vperm.xlu0 %1258, %v1400_v32   ;;  %76 = vperm.xlu1 %1259, %v1409_v34   ;;  %v17_v37 = vld [vmem:[%s1604_s0 + $0x30] sm:$0xff]  ;;  %v1433_v40 = vld [vmem:[%s1605_s1 + $0x8] sm:$0xff]  ;;  %v1438_v41 = vld [vmem:[%s1605_s1 + $0x18] sm:$0xff] }
   0xb   :  { %v36_v42 = vld [vmem:[%s1604_s0 + $0xc8] sm:$0xff]  ;;  %v51_v43 = vld [vmem:[%s1604_s0 + $0x140] sm:$0xff]  ;;  %v1145_v45 = vpack.c.bf16 %v18_v38, %v17_v37  ;;  %v37_v50 = vld [vmem:[%s1604_s0 + $0xd0] sm:$0xff] }
   0xc   :  { %v52_v44 = vld [vmem:[%s1604_s0 + $0x148] sm:$0xff]  ;;  %v1148_v46 = vpack.c.bf16 %v36_v42, %v35_v39  ;;  %v19_v48 = vld [vmem:[%s1604_s0 + $0x40] sm:$0xff]  ;;  %v38_v51 = vld [vmem:[%s1604_s0 + $0xd8] sm:$0xff] }
   0xd   :  { %v1196_v47 = vpack.c.bf16 %v52_v44, %v51_v43  ;;  %v20_v49 = vld [vmem:[%s1604_s0 + $0x48] sm:$0xff]  ;;  %v53_v52 = vld [vmem:[%s1604_s0 + $0x150] sm:$0xff]  ;;  %v54_v53 = vld [vmem:[%s1604_s0 + $0x158] sm:$0xff]  ;;  %v1154_v55 = vpack.c.bf16 %v38_v51, %v37_v50 }
   0xe   :  { %1135 = vmatpush3.bf16.xpose.msk.msra.mxu0 %vm1313_vm1, %v1133_v23  ;;  %1183 = vmatpush3.bf16.xpose.msk.msra.mxu1 %vm1313_vm1, %v1178_v16  ;;  %v1151_v54 = vpack.c.bf16 %v20_v49, %v19_v48  ;;  %v1202_v56 = vpack.c.bf16 %v54_v53, %v53_v52  ;;  %v21_v57 = vld [vmem:[%s1604_s0 + $0x50] sm:$0xff]  ;;  %v22_v58 = vld [vmem:[%s1604_s0 + $0x58] sm:$0xff]  ;;  %v39_v59 = vld [vmem:[%s1604_s0 + $0xe0] sm:$0xff] }
   0xf   :  { %1138 = vmatprep.subr.msk.bf16.mxu0 %vm1313_vm1, %v1136_v24  ;;  %1186 = vmatprep.subr.msk.bf16.mxu1 %vm1313_vm1, %v1184_v25  ;;  %v40_v60 = vld [vmem:[%s1604_s0 + $0xe8] sm:$0xff]  ;;  %v55_v61 = vld [vmem:[%s1604_s0 + $0x160] sm:$0xff]  ;;  %v1157_v63 = vpack.c.bf16 %v22_v58, %v21_v57  ;;  %v41_v5 = vld [vmem:[%s1604_s0 + $0xf0] sm:$0xff] }
  0x10   :  { %71 = vperm.xlu0 %1258, %v1433_v40   ;;  %81 = vperm.xlu1 %1259, %v1438_v41   ;;  %v56_v62 = vld [vmem:[%s1604_s0 + $0x168] sm:$0xff]  ;;  %v1160_v0 = vpack.c.bf16 %v40_v60, %v39_v59  ;;  %v23_v3 = vld [vmem:[%s1604_s0 + $0x60] sm:$0xff]  ;;  %v42_v6 = vld [vmem:[%s1604_s0 + $0xf8] sm:$0xff] }
  0x11   :  { %v1208_v1 = vpack.c.bf16 %v56_v62, %v55_v61  ;;  %v24_v4 = vld [vmem:[%s1604_s0 + $0x68] sm:$0xff]  ;;  %v57_v7 = vld [vmem:[%s1604_s0 + $0x170] sm:$0xff]  ;;  %v58_v8 = vld [vmem:[%s1604_s0 + $0x178] sm:$0xff]  ;;  %v1166_v10 = vpack.c.bf16 %v42_v6, %v41_v5  ;;  %v1288_v5 = vmov 32  }
  0x12   :  { %v1163_v9 = vpack.c.bf16 %v24_v4, %v23_v3  ;;  %v1214_v11 = vpack.c.bf16 %v58_v8, %v57_v7  ;;  %v25_v12 = vld [vmem:[%s1604_s0 + $0x70] sm:$0xff]  ;;  %v26_v13 = vld [vmem:[%s1604_s0 + $0x78] sm:$0xff]  ;;  %v1286_v3 = vmov 0.0|0.0   ;;  %v63_v4 = vld [vmem:[%s1605_s1 + $0x20] sm:$0xf] }
  0x13   :  { %v1169_v14 = vpack.c.bf16 %v26_v13, %v25_v12 }
  0x14   :  { %439 = vrot.lane.b32.xlu0 %v1400_v32, %s1283_s17  ;;  %441 = vrot.lane.b32.xlu1 %v1433_v40, %s1283_s17 }
  0x15   :  { %1261 = vset.pattern.permute.xlu1 %v1285_v18  ;;  %1260 = vset.pattern.permute.xlu0 %v1285_v18 }
  0x16   :  { %1141 = vmatpush3.bf16.xpose.msk.msra.mxu0 %vm1313_vm1, %v1139_v33  ;;  %1189 = vmatpush3.bf16.xpose.msk.msra.mxu1 %vm1313_vm1, %v1184_v25 }
  0x17   :  { %1144 = vmatprep.subr.msk.bf16.mxu0 %vm1313_vm1, %v1142_v35  ;;  %1192 = vmatprep.subr.msk.bf16.mxu1 %vm1313_vm1, %v1190_v36 }
  0x18   :  { %443 = vrot.lane.b32.xlu0 %v1409_v34, %s1283_s17  ;;  %445 = vrot.lane.b32.xlu1 %v1438_v41, %s1283_s17 }
  0x1c   :  { %428 = vperm.xlu1 %1261, %v1433_v40   ;;  %424 = vperm.xlu0 %1260, %v1400_v32  }
  0x1e   :  { %1147 = vmatpush3.bf16.xpose.msk.msra.mxu0 %vm1313_vm1, %v1145_v45  ;;  %1195 = vmatpush3.bf16.xpose.msk.msra.mxu1 %vm1313_vm1, %v1190_v36 }
  0x1f   :  { %1150 = vmatprep.subr.msk.bf16.mxu0 %vm1313_vm1, %v1148_v46  ;;  %1198 = vmatprep.subr.msk.bf16.mxu1 %vm1313_vm1, %v1196_v47 }
  0x20   :  { %432 = vperm.xlu1 %1261, %v1409_v34   ;;  %436 = vperm.xlu0 %1260, %v1438_v41  }
  0x24   :  { %1262 = vset.pattern.permute.xlu1 %v1288_v5  ;;  %1263 = vset.pattern.permute.xlu0 %v1288_v5 }
  0x25   :  { %644 = vperm.xlu1 %1262, %v63_v4  }
  0x26   :  { %1153 = vmatpush3.bf16.xpose.msk.msra.mxu0 %vm1313_vm1, %v1151_v54  ;;  %1201 = vmatpush3.bf16.xpose.msk.msra.mxu1 %vm1313_vm1, %v1196_v47 }
  0x27   :  { %1156 = vmatprep.subr.msk.bf16.mxu0 %vm1313_vm1, %v1154_v55  ;;  %1204 = vmatprep.subr.msk.bf16.mxu1 %vm1313_vm1, %v1202_v56 }
  0x2e   :  { %1159 = vmatpush3.bf16.xpose.msk.msra.mxu0 %vm1313_vm1, %v1157_v63  ;;  %1207 = vmatpush3.bf16.xpose.msk.msra.mxu1 %vm1313_vm1, %v1202_v56 }
  0x2f   :  { %1162 = vmatprep.subr.msk.bf16.mxu0 %vm1313_vm1, %v1160_v0  ;;  %1210 = vmatprep.subr.msk.bf16.mxu1 %vm1313_vm1, %v1208_v1 }
  0x36   :  { %1165 = vmatpush3.bf16.xpose.msk.msra.mxu0 %vm1313_vm1, %v1163_v9  ;;  %1213 = vmatpush3.bf16.xpose.msk.msra.mxu1 %vm1313_vm1, %v1208_v1 }
  0x37   :  { %1168 = vmatprep.subr.msk.bf16.mxu0 %vm1313_vm1, %v1166_v10  ;;  %1216 = vmatprep.subr.msk.bf16.mxu1 %vm1313_vm1, %v1214_v11 }
  0x3e   :  { %1171 = vmatpush3.bf16.xpose.msk.msra.mxu0 %vm1313_vm1, %v1169_v14  ;;  %1219 = vmatpush3.bf16.xpose.msk.msra.mxu1 %vm1313_vm1, %v1214_v11 }
  0x45   :  { %1021 = vmatmul.mubr.msk.f32.vlgmr.msra.gmra.mrb[0].mxu0 %vm84_vm0, %v1400_v32  ;;  %1094 = vmatmul.mubr.msk.f32.vlgmr.msra.gmra.mrb[0].mxu1 %vm84_vm0, %v1433_v40 }
  0x46   :  { %1022 = vmatprep.mubr.msk.f32.mxu0 %vm84_vm0, %v1433_v40  ;;  %1096 = vmatprep.mubr.msk.f32.mxu1 %vm84_vm0, %v1409_v34 }
  0x49   :  { %1023 = vmatmul.mubr.msk.f32.gmra.mrb[2].mxu0 %vm84_vm0, %v1433_v40  ;;  %1097 = vmatmul.mubr.msk.f32.gmra.mrb[2].mxu1 %vm84_vm0, %v1438_v41 }
  0x4a   :  { %1024 = vmatprep.mubr.msk.f32.mxu0 %vm84_vm0, %v1409_v34  ;;  %520 = vmatprep.mubr.f32.mxu1 %v1284_v17 }
  0x4d   :  { %1025 = vmatmul.mubr.msk.f32.gmra.mrb[4].mxu0 %vm84_vm0, %v1409_v34 }
  0x4e   :  { %1026 = vmatprep.mubr.msk.f32.mxu0 %vm84_vm0, %v1438_v41 }
  0x51   :  { %1027 = vmatmul.mubr.msk.f32.gmra.mrb[6].mxu0 %vm84_vm0, %v1438_v41 }
  0x89   :  { %v67_v2 = vpop.permute.xlu0 %66  ;;  %v77_v19 = vpop.permute.xlu1 %76 }
  0x8f   :  { %v72_v15 = vpop.permute.xlu0 %71  ;;  %v82_v26 = vpop.permute.xlu1 %81 }
  0x93   :  { %v1571_v16 = vpop.permute.xlu0 %439  ;;  %v442_v52 = vpop.permute.xlu1 %441 }
  0x94   :  { %1107 = vmatprep.mubr.msk.f32.mxu0 %vm447_vm2, %v1571_v16 }
  0x97   :  { %v444_v58 = vpop.permute.xlu0 %443  ;;  %v446_v0 = vpop.permute.xlu1 %445 }
  0x9b   :  { %v425_v6 = vpop.permute.xlu0 %424  ;;  %v429_v7 = vpop.permute.xlu1 %428 }
  0x9f   :  { %v437_v12 = vpop.permute.xlu0 %436  ;;  %v433_v14 = vpop.permute.xlu1 %432 }
 0x118   :  { %v303_v20 = vpop.f32.mrb[0].mxu0  ;;  %v1095_v21 = vpop.f32.mrb[0].mxu1 }
 0x119   :  { %v398_v22 = vadd.f32 %v1095_v21, %v72_v15  ;;  %v305_v23 = vpop.f32.mrb[1].mxu0  ;;  %v392_v24 = vpop.f32.mrb[1].mxu1  ;;  %v304_v27 = vadd.f32 %v303_v20, %v67_v2 }
 0x11a   :  { %v393_v25 = vadd.f32 %v392_v24, %v67_v2  ;;  %v306_v29 = vadd.f32 %v305_v23, %v67_v2 }
 0x11b   :  { %v416_v28 = vmax.f32 %v398_v22, 0.0  ;;  %v411_v40 = vmax.f32 %v304_v27, 0.0 }
 0x11c   :  { %v413_v30 = vmax.f32 %v393_v25, 0.0  ;;  %v309_v31 = vpop.f32.mrb[2].mxu0  ;;  %v1098_v33 = vpop.f32.mrb[2].mxu1  ;;  %v412_v43 = vmax.f32 %v306_v29, 0.0 }
 0x11d   :  { %v310_v35 = vadd.f32 %v309_v31, %v72_v15  ;;  %v408_v32 = vadd.f32 %v1098_v33, %v82_v26  ;;  %v311_v36 = vpop.f32.mrb[3].mxu0  ;;  %v402_v34 = vpop.f32.mrb[3].mxu1 }
 0x11e   :  { %v1228_v37 = vpack.c.bf16 %v416_v28, %v413_v30  ;;  %v312_v38 = vadd.f32 %v311_v36, %v72_v15  ;;  %v403_v39 = vadd.f32 %v402_v34, %v77_v19 }
 0x11f   :  { %v414_v41 = vmax.f32 %v310_v35, 0.0  ;;  %v422_v42 = vmax.f32 %v408_v32, 0.0 }
 0x120   :  { %v415_v44 = vmax.f32 %v312_v38, 0.0  ;;  %v419_v45 = vmax.f32 %v403_v39, 0.0  ;;  %v315_v46 = vpop.f32.mrb[4].mxu0  ;;  %1229 = vmatprep.subr.bf16.mxu0 %v1228_v37 }
 0x121   :  { %v1222_v47 = vpack.c.bf16 %v414_v41, %v411_v40  ;;  %v317_v48 = vpop.f32.mrb[5].mxu0  ;;  %1231 = vmatpush3.bf16.msra.mxu0 %v1228_v37  ;;  %v316_v51 = vadd.f32 %v315_v46, %v77_v19 }
 0x122   :  { %v1220_v49 = vpack.c.bf16 %v415_v44, %v412_v43  ;;  %v1232_v50 = vpack.c.bf16 %v422_v42, %v419_v45  ;;  %v318_v53 = vadd.f32 %v317_v48, %v77_v19 }
 0x123   :  { %v417_v59 = vmax.f32 %v316_v51, 0.0  ;;  %v645_v51 = vpop.permute.xlu1 %644 }
 0x124   :  { %v321_v54 = vpop.f32.mrb[6].mxu0  ;;  %1221 = vmatprep.subr.bf16.mxu1 %v1220_v49  ;;  %1233 = vmatprep.subr.bf16.mxu0 %v1232_v50  ;;  %v418_v61 = vmax.f32 %v318_v53, 0.0 }
 0x125   :  { %v322_v55 = vadd.f32 %v321_v54, %v82_v26  ;;  %v323_v56 = vpop.f32.mrb[7].mxu0  ;;  %1223 = vmatpush1.bf16.msra.mxu1 %v1222_v47  ;;  %1235 = vmatpush3.bf16.msra.mxu0 %v1232_v50 }
 0x126   :  { %v324_v57 = vadd.f32 %v323_v56, %v82_v26 }
 0x127   :  { %v420_v60 = vmax.f32 %v322_v55, 0.0 }
 0x128   :  { %v421_v62 = vmax.f32 %v324_v57, 0.0  ;;  %1108 = vmatmul.mubr.msk.f32.vlgmr.msra.gmra.mrb[8].mxu0 %vm447_vm2, %v442_v52 }
 0x129   :  { %v1226_v63 = vpack.c.bf16 %v420_v60, %v417_v59  ;;  %1110 = vmatprep.mubr.msk.f32.mxu0 %vm447_vm2, %v444_v58 }
 0x12a   :  { %v1224_v1 = vpack.c.bf16 %v421_v62, %v418_v61 }
 0x12c   :  { %1225 = vmatprep.subr.bf16.mxu1 %v1224_v1  ;;  %1111 = vmatmul.mubr.msk.f32.gmra.mrb[10].mxu0 %vm447_vm2, %v446_v0 }
 0x12d   :  { %1227 = vmatpush1.bf16.msra.mxu1 %v1226_v63  ;;  %713 = vmatprep.mubr.f32.mxu0 %v1284_v17 }
 0x12e   :  { %1244 = vmatprep.subr.bf16.mxu1 %v1286_v3 }
 0x130   :  { %974 = vmatmul.mubr.msk.f32.vlgmr.msra.gmra.mrb[4].mxu1 %vm447_vm2, %v1571_v16 }
 0x131   :  { %526 = vmatprep.mubr.f32.mxu1 %v1284_v17 }
 0x134   :  { %975 = vmatmul.mubr.msk.f32.gmra.mrb[6].mxu1 %vm447_vm2, %v442_v52 }
 0x135   :  { %532 = vmatprep.mubr.f32.mxu1 %v1284_v17 }
 0x138   :  { %976 = vmatmul.mubr.msk.f32.gmra.mrb[8].mxu1 %vm447_vm2, %v444_v58 }
 0x139   :  { %538 = vmatprep.mubr.f32.mxu1 %v1284_v17 }
 0x13c   :  { %977 = vmatmul.mubr.msk.f32.gmra.mrb[10].mxu1 %vm447_vm2, %v446_v0 }
 0x13d   :  { %1121 = vmatprep.mubr.msk.f32.mxu1 %vm1287_vm3, %v1284_v17 }
 0x1fb   :  { %v1109_v8 = vpop.f32.mrb[8].mxu0 }
 0x1fc   :  { %v617_v9 = vadd.f32 %v1109_v8, %v429_v7  ;;  %v611_v10 = vpop.f32.mrb[9].mxu0 }
 0x1fd   :  { %v612_v11 = vadd.f32 %v611_v10, %v425_v6 }
 0x1fe   :  { %v635_v13 = vmax.f32 %v617_v9, 0.0 }
 0x1ff   :  { %v632_v2 = vmax.f32 %v612_v11, 0.0  ;;  %v1112_v15 = vpop.f32.mrb[10].mxu0 }
 0x200   :  { %v627_v16 = vadd.f32 %v1112_v15, %v437_v12  ;;  %v621_v17 = vpop.f32.mrb[11].mxu0 }
 0x201   :  { %v1245_v18 = vpack.c.bf16 %v635_v13, %v632_v2  ;;  %v622_v19 = vadd.f32 %v621_v17, %v433_v14 }
 0x202   :  { %v641_v20 = vmax.f32 %v627_v16, 0.0 }
 0x203   :  { %v638_v21 = vmax.f32 %v622_v19, 0.0  ;;  %v522_v22 = vpop.f32.mrb[4].mxu1  ;;  %1246 = vmatpush3.bf16.msra.mxu1 %v1245_v18 }
 0x204   :  { %v524_v23 = vpop.f32.mrb[5].mxu1  ;;  %1247 = vmatprep.subr.bf16.mxu1 %v1286_v3  ;;  %v523_v25 = vadd.f32 %v522_v22, %v425_v6 }
 0x205   :  { %v1248_v24 = vpack.c.bf16 %v641_v20, %v638_v21  ;;  %v525_v26 = vadd.f32 %v524_v23, %v425_v6 }
 0x206   :  { %v630_v31 = vmax.f32 %v523_v25, 0.0 }
 0x207   :  { %v528_v27 = vpop.f32.mrb[6].mxu1  ;;  %1249 = vmatpush3.bf16.msra.mxu1 %v1248_v24  ;;  %v631_v35 = vmax.f32 %v525_v26, 0.0 }
 0x208   :  { %v529_v28 = vadd.f32 %v528_v27, %v429_v7  ;;  %v530_v29 = vpop.f32.mrb[7].mxu1  ;;  %v1289_v27 = vmov 1966171168  }
 0x209   :  { %v531_v30 = vadd.f32 %v530_v29, %v429_v7  ;;  %v857_v29 = vlaneseq }
 0x20a   :  { %v633_v33 = vmax.f32 %v529_v28, 0.0  ;;  %1122 = vmatmul.mubr.msk.f32.vlgmr.msra.gmra.mrb[12].mxu1 %vm447_vm2, %v63_v4  ;;  %v855_v28 = vunpack.c.l.s4 %v1289_v27 }
 0x20b   :  { %v634_v32 = vmax.f32 %v531_v30, 0.0  ;;  %v534_v36 = vpop.f32.mrb[8].mxu1  ;;  %vm879_vm4 = vcmp.lt.s32.totalorder %v857_v29, 384 }
 0x20c   :  { %v1238_v34 = vpack.c.bf16 %v633_v33, %v630_v31  ;;  %v536_v37 = vpop.f32.mrb[9].mxu1  ;;  %v535_v39 = vadd.f32 %v534_v36, %v433_v14  ;;  %v858_v36 = vshrl.u32 %v857_v29, 7 }
 0x20d   :  { %v1236_v38 = vpack.c.bf16 %v634_v32, %v631_v35  ;;  %v537_v40 = vadd.f32 %v536_v37, %v433_v14  ;;  %v856_v32 = vunpack.c.0.s8 %v855_v28 }
 0x20e   :  { %v636_v45 = vmax.f32 %v535_v39, 0.0 }
 0x20f   :  { %v540_v41 = vpop.f32.mrb[10].mxu1  ;;  %1237 = vmatprep.subr.bf16.mxu0 %v1236_v38  ;;  %v637_v47 = vmax.f32 %v537_v40, 0.0 }
 0x210   :  { %v541_v42 = vadd.f32 %v540_v41, %v437_v12  ;;  %v542_v43 = vpop.f32.mrb[11].mxu1  ;;  %1239 = vmatpush1.bf16.msra.mxu0 %v1238_v34 }
 0x211   :  { %v543_v44 = vadd.f32 %v542_v43, %v437_v12 }
 0x212   :  { %v639_v46 = vmax.f32 %v541_v42, 0.0  ;;  %v859_v42 = vsub.s32 %v856_v32, %v858_v36 }
 0x213   :  { %v640_v48 = vmax.f32 %v543_v44, 0.0 }
 0x214   :  { %v1242_v49 = vpack.c.bf16 %v639_v46, %v636_v45 }
 0x215   :  { %v1240_v50 = vpack.c.bf16 %v640_v48, %v637_v47 }
 0x217   :  { %1241 = vmatprep.subr.bf16.mxu0 %v1240_v50 }
 0x218   :  { %1243 = vmatpush1.bf16.msra.mxu0 %v1242_v49 }
 0x21b   :  { %982 = vmatmul.mubr.msk.f32.vlgmr.msra.gmra.mrb[12].mxu0 %vm447_vm2, %v63_v4 }
 0x2dd   :  { %v786_v52 = vpop.f32.mrb[12].mxu1 }
 0x2de   :  { %v787_v53 = vadd.f32 %v786_v52, %v645_v51  ;;  %v1123_v54 = vpop.f32.mrb[13].mxu1 }
 0x2e0   :  { %v986_v55 = vclamps-f32 %v787_v53, 13.815511 }
 0x2e2   :  { %v800_v56 = vmul.f32 1.442695, %v986_v55 }
 0x2e4   :  { %1264 = vpow2.f32 %v800_v56 }
 0x2ee   :  { %v1265_v57 = vpop.eup %1264  ;;  %v715_v58 = vpop.f32.mrb[12].mxu0 }
 0x2ef   :  { %v804_v59 = vadd.f32 1.0, %v1265_v57  ;;  %v716_v60 = vadd.f32 %v715_v58, %v645_v51  ;;  %v717_v61 = vpop.f32.mrb[13].mxu0 }
 0x2f0   :  { %v718_v62 = vadd.f32 %v717_v61, %v645_v51 }
 0x2f1   :  { %1266 = vlog2.f32 %v804_v59  ;;  %v984_v63 = vclamps-f32 %v716_v60, 13.815511 }
 0x2f2   :  { %v985_v0 = vclamps-f32 %v718_v62, 13.815511 }
 0x2f3   :  { %v796_v1 = vmul.f32 1.442695, %v984_v63 }
 0x2f4   :  { %v798_v3 = vmul.f32 1.442695, %v985_v0 }
 0x2f5   :  { %1268 = vpow2.f32 %v796_v1 }
 0x2f6   :  { %1270 = vpow2.f32 %v798_v3 }
 0x2fb   :  { %v1267_v4 = vpop.eup %1266 }
 0x2fc   :  { %v810_v5 = vmul.f32 0.6931472, %v1267_v4 }
 0x2fe   :  { %v813_v8 = vadd.f32 1.0, %v810_v5 }
 0x2ff   :  { %v1269_v6 = vpop.eup %1268 }
 0x300   :  { %v1271_v7 = vpop.eup %1270  ;;  %v802_v9 = vadd.f32 1.0, %v1269_v6  ;;  %v819_v11 = vrot.slane %v813_v8, 6 }
 0x301   :  { %v803_v10 = vadd.f32 1.0, %v1271_v7 }
 0x302   :  { %1272 = vlog2.f32 %v802_v9  ;;  %v825_v12 = vadd.f32 %v819_v11, %v813_v8 }
 0x303   :  { %1274 = vlog2.f32 %v803_v10 }
 0x304   :  { %v828_v14 = vmax.f32 %v825_v12, 1e-06 }
 0x306   :  { %1276 = vrcp.f32 %v828_v14 }
 0x30c   :  { %v1273_v13 = vpop.eup %1272 }
 0x30d   :  { %v1275_v2 = vpop.eup %1274  ;;  %v806_v15 = vmul.f32 0.6931472, %v1273_v13 }
 0x30e   :  { %v808_v16 = vmul.f32 0.6931472, %v1275_v2 }
 0x30f   :  { %v811_v17 = vadd.f32 1.0, %v806_v15 }
 0x310   :  { %v812_v18 = vadd.f32 1.0, %v808_v16  ;;  %v1277_v25 = vpop.eup %1276 }
 0x311   :  { %v817_v19 = vrot.slane %v811_v17, 6  ;;  %v837_v26 = vrot.slane %v1277_v25, 2 }
 0x312   :  { %v818_v20 = vrot.slane %v812_v18, 6 }
 0x313   :  { %v823_v21 = vadd.f32 %v817_v19, %v811_v17  ;;  %v843_v31 = vmul.f32 %v837_v26, %v813_v8 }
 0x314   :  { %v824_v22 = vadd.f32 %v818_v20, %v812_v18 }
 0x315   :  { %v826_v23 = vmax.f32 %v823_v21, 1e-06  ;;  %v846_v38 = vmul.f32 10.0, %v843_v31  ;;  %v884_v43 = vmul.f32 0.154333, %v843_v31 }
 0x316   :  { %v827_v24 = vmax.f32 %v824_v22, 1e-06 }
 0x317   :  { %1278 = vrcp.f32 %v826_v23  ;;  %v849_v47 = vadd.f32 -5.0, %v846_v38  ;;  %v902_v50 = vrot.slane %v884_v43, %v859_v42 }
 0x318   :  { %1280 = vrcp.f32 %v827_v24 }
 0x319   :  { %v867_v53 = vrot.slane %v849_v47, %v859_v42 }
 0x321   :  { %v1279_v30 = vpop.eup %1278 }
 0x322   :  { %v1281_v33 = vpop.eup %1280  ;;  %v835_v35 = vrot.slane %v1279_v30, 2 }
 0x323   :  { %v836_v34 = vrot.slane %v1281_v33, 2 }
 0x324   :  { %v841_v37 = vmul.f32 %v835_v35, %v811_v17 }
 0x325   :  { %v842_v39 = vmul.f32 %v836_v34, %v812_v18 }
 0x326   :  { %v844_v40 = vmul.f32 10.0, %v841_v37  ;;  %v882_v41 = vmul.f32 0.154333, %v841_v37 }
 0x327   :  { %v845_v44 = vmul.f32 10.0, %v842_v39  ;;  %v883_v45 = vmul.f32 0.154333, %v842_v39 }
 0x328   :  { %v847_v46 = vadd.f32 -5.0, %v844_v40 }
 0x329   :  { %v848_v48 = vadd.f32 -5.0, %v845_v44  ;;  %v888_v49 = vcombine.low %v882_v41, %v883_v45 }
 0x32b   :  { %v853_v51 = vcombine.low %v847_v46, %v848_v48  ;;  %v895_v52 = vrot.slane %v888_v49, %v859_v42 }
 0x32d   :  { %v860_v54 = vrot.slane %v853_v51, %v859_v42  ;;  %v903_v55 = vcombine.high %v895_v52, %v902_v50 }
 0x32f   :  { %v868_v56 = vcombine.low %v860_v54, %v867_v53  ;;  %v910_v57 = vrot.slane %v903_v55, %v859_v42 }
 0x331   :  { %v875_v58 = vrot.slane %v868_v56, %v859_v42  ;;  %987 = vst.msk [vmem:[%s1606_s2 + $0x1] ss:$2 sm:$0x7] %vm879_vm4, %v910_v57 }
 0x333   :  { %881 = vst.msk [vmem:[%s1606_s2] ss:$2 sm:$0x7] %vm879_vm4, %v875_v58 }

</bundles_post_ra>
